<compile_context>
chip_gen: v5e
topology: v5e:2x2
jax: 0.10.0
libtpu: 0.0.40
codegen_flags: <defaults>
</compile_context>

<pallas_src>
import functools

import jax
import jax.numpy as jnp
from jax.experimental import pallas as pl
from jax.experimental.pallas import tpu as pltpu


LEAKY_SLOPE = 0.01  # torch.nn.LeakyReLU default negative_slope


def _round_up(n: int, m: int) -> int:
    return ((n + m - 1) // m) * m


def make_mlp_kernel(num_layers: int, compute_dtype):
    """Fused MLP kernel.

    refs layout: (x_ref, w0, b0, w1, b1, ..., w_{L-1}, b_{L-1}, o_ref)
    Each w is (in_pad, out_pad) in compute_dtype, each b is (1, out_pad) f32;
    all VMEM-resident across the whole grid.
    """

    def kernel(*refs):
        x_ref = refs[0]
        o_ref = refs[-1]
        h = x_ref[...]  # already compute_dtype (cast once in the wrapper)
        for l in range(num_layers):
            w = refs[1 + 2 * l][...]
            b = refs[2 + 2 * l][...]          # (1, out_pad) f32, implicit bcast
            # MXU matmul in compute_dtype, f32 accumulate + f32 bias add.
            h = jnp.dot(h.astype(compute_dtype), w,
                        preferred_element_type=jnp.float32) + b
            if l < num_layers - 1:
                # LeakyReLU (kept in f32 on the VPU: v5e-safe).
                h = jnp.where(h >= 0, h, LEAKY_SLOPE * h)
                # Dropout(p=0.05): identity in eval mode.
        o_ref[...] = h.astype(o_ref.dtype)

    return kernel


def linear_model_forward(x, params, *, block_b=None,
                         compute_dtype=jnp.float32):
    """params: list of (W, b) with W shaped (in, out) and b shaped (1, out).

    Handles arbitrary batch sizes and arbitrary feature widths by zero-padding
    to TPU-friendly shapes; the padding is sliced away before returning.
    """
    B, in_dim = x.shape
    num_layers = len(params)
    out_dim = params[-1][0].shape[1]
    out_pad = _round_up(out_dim, 128)
    in_pad = _round_up(in_dim, 128)

    # --- batch tiling ------------------------------------------------------
    if block_b is None:
        # Biggest tile <= 512 rows that still leaves >= 2 grid blocks when the
        # batch is large enough (keeps both v7x TensorCores busy).
        block_b = min(512, max(8, _round_up(pl.cdiv(B, 2), 8)))
        block_b = min(block_b, _round_up(B, 8))
    B_pad = _round_up(B, block_b)
    grid = (B_pad // block_b,)

    # --- pad inputs / params to lane-dense shapes --------------------------
    x_p = jnp.zeros((B_pad, in_pad), compute_dtype)
    x_p = x_p.at[:B, :in_dim].set(x.astype(compute_dtype))

    args = [x_p]
    in_specs = [pl.BlockSpec((block_b, in_pad), lambda i: (i, 0))]
    for w, b in params:
        fi, fo = w.shape
        fi_p, fo_p = _round_up(fi, 128), _round_up(fo, 128)
        w_p = jnp.zeros((fi_p, fo_p), compute_dtype)
        w_p = w_p.at[:fi, :fo].set(w.astype(compute_dtype))
        b_p = jnp.zeros((1, fo_p), jnp.float32).at[:, :fo].set(b)
        # Constant index_map: weights/biases stay resident across grid steps.
        in_specs.append(pl.BlockSpec((fi_p, fo_p), lambda i: (0, 0)))
        in_specs.append(pl.BlockSpec((1, fo_p), lambda i: (0, 0)))
        args.append(w_p)
        args.append(b_p)

    out_specs = pl.BlockSpec((block_b, out_pad), lambda i: (i, 0))

    out_padded = pl.pallas_call(
        make_mlp_kernel(num_layers, compute_dtype),
        out_shape=jax.ShapeDtypeStruct((B_pad, out_pad), jnp.float32),
        grid=grid,
        in_specs=in_specs,
        out_specs=out_specs,
        compiler_params=pltpu.CompilerParams(
            dimension_semantics=("parallel",)
        ),
    )(*args)

    # Strip batch / lane padding.
    return out_padded[:B, :out_dim].astype(x.dtype)


def init_params(sizes, key):
    """Deterministic init mimicking torch.nn.Linear defaults:
    W, b ~ U(-1/sqrt(fan_in), 1/sqrt(fan_in)). W returned as (in, out)."""
    params = []
    for (fan_in, fan_out) in sizes:
        key, kw, kb = jax.random.split(key, 3)
        bound = 1.0 / jnp.sqrt(jnp.float32(fan_in))
        w = jax.random.uniform(
            kw, (fan_in, fan_out), jnp.float32, minval=-bound, maxval=bound
        )
        b = jax.random.uniform(
            kb, (1, fan_out), jnp.float32, minval=-bound, maxval=bound
        )
        params.append((w, b))
    return params


def reference_forward(x, params):
    h = x
    for l, (w, b) in enumerate(params):
        h = h @ w + b
        if l < len(params) - 1:
            h = jnp.where(h >= 0, h, LEAKY_SLOPE * h)
    return h


if __name__ == "__main__":
    key = jax.random.PRNGKey(0)
    key, kx = jax.random.split(key)

    # sizes as passed to LinearModel.__init__: list of (in, out) pairs.
    sizes = [(32, 64), (64, 64), (64, 16)]
    batch = 50  # deliberately ragged: exercises batch padding + >=2 grid blocks

    x = jax.random.normal(kx, (batch, sizes[0][0]), jnp.float32)
    params = init_params(sizes, key)
    ref = reference_forward(x, params)

    # f32 path (exact check).
    fwd_f32 = jax.jit(functools.partial(linear_model_forward,
                                        compute_dtype=jnp.float32))
    out_f32 = jax.block_until_ready(fwd_f32(x, params))
    assert out_f32.shape == (batch, sizes[-1][1])
    assert jnp.allclose(out_f32, ref, atol=1e-4, rtol=1e-4)

    # bf16-matmul path (v6e/v7x-friendly; looser tolerance).
    fwd_bf16 = jax.jit(functools.partial(linear_model_forward,
                                         compute_dtype=jnp.bfloat16))
    out_bf16 = jax.block_until_ready(fwd_bf16(x, params))
    assert out_bf16.shape == (batch, sizes[-1][1])
    assert jnp.allclose(out_bf16, ref, atol=2e-2, rtol=2e-2)

    print("KERNEL_OK")
</pallas_src>

<mosaic_0001>
module attributes {stable_mosaic.version = 11 : i64} {
  func.func @kernel(%arg0: i32, %arg1: memref<32x128xf32, #tpu.memory_space<vmem>>, %arg2: memref<128x128xf32, #tpu.memory_space<vmem>>, %arg3: memref<1x128xf32, #tpu.memory_space<vmem>>, %arg4: memref<128x128xf32, #tpu.memory_space<vmem>>, %arg5: memref<1x128xf32, #tpu.memory_space<vmem>>, %arg6: memref<128x128xf32, #tpu.memory_space<vmem>>, %arg7: memref<1x128xf32, #tpu.memory_space<vmem>>, %arg8: memref<32x128xf32, #tpu.memory_space<vmem>>) attributes {dimension_semantics = [#tpu.dimension_semantics<parallel>], iteration_bounds = array<i64: 2>, scalar_prefetch = 0 : i64, scratch_operands = 0 : i64, tpu.core_type = #tpu.core_type<tc>, window_params = [{transform_indices = @transform_0, window_bounds = array<i64: 32, 128>}, {pipeline_mode = #tpu.pipeline_mode<synchronous>, transform_indices = @transform_1, window_bounds = array<i64: 128, 128>}, {pipeline_mode = #tpu.pipeline_mode<synchronous>, transform_indices = @transform_2, window_bounds = array<i64: 1, 128>}, {pipeline_mode = #tpu.pipeline_mode<synchronous>, transform_indices = @transform_3, window_bounds = array<i64: 128, 128>}, {pipeline_mode = #tpu.pipeline_mode<synchronous>, transform_indices = @transform_4, window_bounds = array<i64: 1, 128>}, {pipeline_mode = #tpu.pipeline_mode<synchronous>, transform_indices = @transform_5, window_bounds = array<i64: 128, 128>}, {pipeline_mode = #tpu.pipeline_mode<synchronous>, transform_indices = @transform_6, window_bounds = array<i64: 1, 128>}, {transform_indices = @transform_7, window_bounds = array<i64: 32, 128>}]} {
    %c0 = arith.constant 0 : index
    %c0_0 = arith.constant 0 : index
    %0 = vector.load %arg1[%c0, %c0_0] : memref<32x128xf32, #tpu.memory_space<vmem>>, vector<32x128xf32>
    %c0_1 = arith.constant 0 : index
    %c0_2 = arith.constant 0 : index
    %1 = vector.load %arg2[%c0_1, %c0_2] : memref<128x128xf32, #tpu.memory_space<vmem>>, vector<128x128xf32>
    %c0_3 = arith.constant 0 : index
    %c0_4 = arith.constant 0 : index
    %2 = vector.load %arg3[%c0_3, %c0_4] : memref<1x128xf32, #tpu.memory_space<vmem>>, vector<1x128xf32>
    %cst = arith.constant dense<0.000000e+00> : vector<32x128xf32>
    %3 = tpu.matmul %0, %1, %cst {dimension_numbers = #tpu.dot_dimension_numbers<[1], [0], [0], [1], [0, 0, 1, 1], [], []>} : vector<32x128xf32>, vector<128x128xf32>, vector<32x128xf32> -> vector<32x128xf32>
    %4 = vector.broadcast %2 : vector<1x128xf32> to vector<32x128xf32>
    %5 = arith.addf %3, %4 : vector<32x128xf32>
    %cst_5 = arith.constant 0.000000e+00 : f32
    %6 = vector.broadcast %cst_5 : f32 to vector<32x128xf32>
    %7 = arith.cmpf oge, %5, %6 : vector<32x128xf32>
    %cst_6 = arith.constant 0.00999999977 : f32
    %8 = vector.broadcast %cst_6 : f32 to vector<32x128xf32>
    %9 = arith.mulf %8, %5 : vector<32x128xf32>
    %10 = arith.select %7, %5, %9 : vector<32x128xi1>, vector<32x128xf32>
    %c0_7 = arith.constant 0 : index
    %c0_8 = arith.constant 0 : index
    %11 = vector.load %arg4[%c0_7, %c0_8] : memref<128x128xf32, #tpu.memory_space<vmem>>, vector<128x128xf32>
    %c0_9 = arith.constant 0 : index
    %c0_10 = arith.constant 0 : index
    %12 = vector.load %arg5[%c0_9, %c0_10] : memref<1x128xf32, #tpu.memory_space<vmem>>, vector<1x128xf32>
    %cst_11 = arith.constant dense<0.000000e+00> : vector<32x128xf32>
    %13 = tpu.matmul %10, %11, %cst_11 {dimension_numbers = #tpu.dot_dimension_numbers<[1], [0], [0], [1], [0, 0, 1, 1], [], []>} : vector<32x128xf32>, vector<128x128xf32>, vector<32x128xf32> -> vector<32x128xf32>
    %14 = vector.broadcast %12 : vector<1x128xf32> to vector<32x128xf32>
    %15 = arith.addf %13, %14 : vector<32x128xf32>
    %cst_12 = arith.constant 0.000000e+00 : f32
    %16 = vector.broadcast %cst_12 : f32 to vector<32x128xf32>
    %17 = arith.cmpf oge, %15, %16 : vector<32x128xf32>
    %cst_13 = arith.constant 0.00999999977 : f32
    %18 = vector.broadcast %cst_13 : f32 to vector<32x128xf32>
    %19 = arith.mulf %18, %15 : vector<32x128xf32>
    %20 = arith.select %17, %15, %19 : vector<32x128xi1>, vector<32x128xf32>
    %c0_14 = arith.constant 0 : index
    %c0_15 = arith.constant 0 : index
    %21 = vector.load %arg6[%c0_14, %c0_15] : memref<128x128xf32, #tpu.memory_space<vmem>>, vector<128x128xf32>
    %c0_16 = arith.constant 0 : index
    %c0_17 = arith.constant 0 : index
    %22 = vector.load %arg7[%c0_16, %c0_17] : memref<1x128xf32, #tpu.memory_space<vmem>>, vector<1x128xf32>
    %cst_18 = arith.constant dense<0.000000e+00> : vector<32x128xf32>
    %23 = tpu.matmul %20, %21, %cst_18 {dimension_numbers = #tpu.dot_dimension_numbers<[1], [0], [0], [1], [0, 0, 1, 1], [], []>} : vector<32x128xf32>, vector<128x128xf32>, vector<32x128xf32> -> vector<32x128xf32>
    %24 = vector.broadcast %22 : vector<1x128xf32> to vector<32x128xf32>
    %25 = arith.addf %23, %24 : vector<32x128xf32>
    %c0_19 = arith.constant 0 : index
    %c0_20 = arith.constant 0 : index
    %26 = vector.load %arg8[%c0_19, %c0_20] : memref<32x128xf32, #tpu.memory_space<vmem>>, vector<32x128xf32>
    tpu.vector_store %arg8[%c0_19, %c0_20], %25 {strides = array<i32>} : memref<32x128xf32, #tpu.memory_space<vmem>>, vector<32x128xf32>,
    return
  }
  func.func @transform_0(%arg0: i32) -> (i32, i32) {
    %c0_i32 = arith.constant 0 : i32
    %c0_i32_0 = arith.constant 0 : i32
    return %arg0, %c0_i32 : i32, i32
  }
  func.func @transform_1(%arg0: i32) -> (i32, i32) {
    %c0_i32 = arith.constant 0 : i32
    %c0_i32_0 = arith.constant 0 : i32
    %c0_i32_1 = arith.constant 0 : i32
    return %c0_i32, %c0_i32_0 : i32, i32
  }
  func.func @transform_2(%arg0: i32) -> (i32, i32) {
    %c0_i32 = arith.constant 0 : i32
    %c0_i32_0 = arith.constant 0 : i32
    %c0_i32_1 = arith.constant 0 : i32
    return %c0_i32, %c0_i32_0 : i32, i32
  }
  func.func @transform_3(%arg0: i32) -> (i32, i32) {
    %c0_i32 = arith.constant 0 : i32
    %c0_i32_0 = arith.constant 0 : i32
    %c0_i32_1 = arith.constant 0 : i32
    return %c0_i32, %c0_i32_0 : i32, i32
  }
  func.func @transform_4(%arg0: i32) -> (i32, i32) {
    %c0_i32 = arith.constant 0 : i32
    %c0_i32_0 = arith.constant 0 : i32
    %c0_i32_1 = arith.constant 0 : i32
    return %c0_i32, %c0_i32_0 : i32, i32
  }
  func.func @transform_5(%arg0: i32) -> (i32, i32) {
    %c0_i32 = arith.constant 0 : i32
    %c0_i32_0 = arith.constant 0 : i32
    %c0_i32_1 = arith.constant 0 : i32
    return %c0_i32, %c0_i32_0 : i32, i32
  }
  func.func @transform_6(%arg0: i32) -> (i32, i32) {
    %c0_i32 = arith.constant 0 : i32
    %c0_i32_0 = arith.constant 0 : i32
    %c0_i32_1 = arith.constant 0 : i32
    return %c0_i32, %c0_i32_0 : i32, i32
  }
  func.func @transform_7(%arg0: i32) -> (i32, i32) {
    %c0_i32 = arith.constant 0 : i32
    %c0_i32_0 = arith.constant 0 : i32
    return %arg0, %c0_i32 : i32, i32
  }
}

</mosaic_0001>

<bundles_post_ra>
// kernel: linear_model_forward.1
= control target key start
LH: loop header
LB: loop body
LE: loop exit
PB: predicated region body
PF: predicated region fallthrough
CT: control target
= control target key end

     0   :  { %s603_s24 = smov 0   ;;  %s780_s0 = inlined_call_operand.vmem [shape: f32[64,128], index: 0, kind: input, shape index: {}]   ;;  %s781_s1 = inlined_call_operand.vmem [shape: f32[128,128], index: 1, kind: input, shape index: {}]   ;;  %s782_s2 = inlined_call_operand.vmem [shape: f32[1,128], index: 2, kind: input, shape index: {}]   ;;  %s783_s3 = inlined_call_operand.vmem [shape: f32[128,128], index: 3, kind: input, shape index: {}]   ;;  %s784_s4 = inlined_call_operand.vmem [shape: f32[1,128], index: 4, kind: input, shape index: {}]   ;;  %s785_s5 = inlined_call_operand.vmem [shape: f32[128,128], index: 5, kind: input, shape index: {}]   ;;  %s786_s6 = inlined_call_operand.vmem [shape: f32[1,128], index: 6, kind: input, shape index: {}]   ;;  %s787_s7 = inlined_call_operand.vmem [shape: f32[64,128], index: 7, kind: output, shape index: {}]  }
   0x1 LB: > { %s517_s25 = sadd.s32 4294967295, %s561_s24   ;;  %p521_p0 = scmp.ge.s32.totalorder %s561_s24, 1  ;;  %s561_s24 = sphi %s603_s24, %s17_s24  }
   0x2   : > { %p238_p1 = scmp.lt.s32.totalorder %s561_s24, 3 }
   0x4   : > { %p239_p2 = pnand %p521_p0, %p238_p1 }
   0x5   : > { %s522_s19 = sshll.u32 (!%p239_p2), %s517_s25, 2 }
   0x6   : > { %242 = sbr.rel (%p239_p2) target bundleno = 464 (0x1d0), region = 48  ;;  %p271_p3 = scmp.lt.s32.totalorder (!%p239_p2), %s522_s19, 7 }
   0xb   : > { %v301_v0 = vld [vmem:[%s781_s1 + $0x78] sm:$0xff]  ;;  %v300_v1 = vld [vmem:[%s781_s1 + $0x70] sm:$0xff]  ;;  %v299_v2 = vld [vmem:[%s781_s1 + $0x68] sm:$0xff]  ;;  %s789_s19 = smov (!%p271_p3, %s522_s19), 7 }
   0xc   : > { %306 = vmatpush.msra.mxu0 %v301_v0  ;;  %528 = vmatpush.msra.mxu3 %v301_v0  ;;  %v298_v3 = vld [vmem:[%s781_s1 + $0x60] sm:$0xff]  ;;  %v297_v4 = vld [vmem:[%s781_s1 + $0x58] sm:$0xff]  ;;  %v296_v5 = vld [vmem:[%s781_s1 + $0x50] sm:$0xff]  ;;  %s523_s16 = sshll.u32 %s789_s19, 3 }
   0xd   : > { %v295_v6 = vld [vmem:[%s781_s1 + $0x48] sm:$0xff]  ;;  %v294_v7 = vld [vmem:[%s781_s1 + $0x40] sm:$0xff]  ;;  %v293_v8 = vld [vmem:[%s781_s1 + $0x38] sm:$0xff]  ;;  %s274_s29 = scalar_lea.vmem %s780_s0, %s523_s16  ;;  %s280_s10 = scalar_lea.vmem %s787_s7, %s523_s16 }
   0xe   : > { %307 = vmatpush.msra.mxu0 %v300_v1  ;;  %529 = vmatpush.msra.mxu3 %v300_v1  ;;  %v292_v9 = vld [vmem:[%s781_s1 + $0x30] sm:$0xff]  ;;  %v362_v10 = vld [vmem:[%s783_s3 + $0x78] sm:$0xff]  ;;  %v291_v12 = vld [vmem:[%s781_s1 + $0x28] sm:$0xff] }
   0xf   : > { %v361_v11 = vld [vmem:[%s783_s3 + $0x70] sm:$0xff]  ;;  %367 = vmatpush.msra.mxu1 %v362_v10  ;;  %v360_v13 = vld [vmem:[%s783_s3 + $0x68] sm:$0xff]  ;;  %v290_v14 = vld [vmem:[%s781_s1 + $0x20] sm:$0xff] }
  0x10   : > { %308 = vmatpush.msra.mxu0 %v299_v2  ;;  %530 = vmatpush.msra.mxu3 %v299_v2  ;;  %v359_v15 = vld [vmem:[%s783_s3 + $0x60] sm:$0xff]  ;;  %v289_v16 = vld [vmem:[%s781_s1 + $0x18] sm:$0xff]  ;;  %v288_v18 = vld [vmem:[%s781_s1 + $0x10] sm:$0xff] }
  0x11   : > { %368 = vmatpush.msra.mxu1 %v361_v11  ;;  %v358_v17 = vld [vmem:[%s783_s3 + $0x58] sm:$0xff]  ;;  %v357_v19 = vld [vmem:[%s783_s3 + $0x50] sm:$0xff]  ;;  %v287_v20 = vld [vmem:[%s781_s1 + $0x8] sm:$0xff] }
  0x12   : > { %309 = vmatpush.msra.mxu0 %v298_v3  ;;  %531 = vmatpush.msra.mxu3 %v298_v3  ;;  %v356_v21 = vld [vmem:[%s783_s3 + $0x48] sm:$0xff]  ;;  %v286_v22 = vld [vmem:[%s781_s1] sm:$0xff]  ;;  %v354_v26 = vld [vmem:[%s783_s3 + $0x38] sm:$0xff] }
  0x13   : > { %369 = vmatpush.msra.mxu1 %v360_v13  ;;  %v282_v23 = vld [vmem:[%s274_s29] sm:$0xff]  ;;  %v283_v24 = vld [vmem:[%s274_s29 + $0x8] sm:$0xff]  ;;  %v353_v27 = vld [vmem:[%s783_s3 + $0x30] sm:$0xff] }
  0x14   : > { %310 = vmatpush.msra.mxu0 %v297_v4  ;;  %532 = vmatpush.msra.mxu3 %v297_v4  ;;  %v355_v25 = vld [vmem:[%s783_s3 + $0x40] sm:$0xff]  ;;  %v352_v28 = vld [vmem:[%s783_s3 + $0x28] sm:$0xff]  ;;  %v284_v29 = vld [vmem:[%s274_s29 + $0x10] sm:$0xff] }
  0x15   : > { %370 = vmatpush.msra.mxu1 %v359_v15  ;;  %v351_v30 = vld [vmem:[%s783_s3 + $0x20] sm:$0xff]  ;;  %v350_v31 = vld [vmem:[%s783_s3 + $0x18] sm:$0xff]  ;;  %v349_v33 = vld [vmem:[%s783_s3 + $0x10] sm:$0xff] }
  0x16   : > { %311 = vmatpush.msra.mxu0 %v296_v5  ;;  %533 = vmatpush.msra.mxu3 %v296_v5  ;;  %v285_v32 = vld [vmem:[%s274_s29 + $0x18] sm:$0xff]  ;;  %v348_v34 = vld [vmem:[%s783_s3 + $0x8] sm:$0xff]  ;;  %v347_v35 = vld [vmem:[%s783_s3] sm:$0xff] }
  0x17   : > { %371 = vmatpush.msra.mxu1 %v358_v17  ;;  %v552_v36 = vld [vmem:[%s782_s2] ss:$0 sm:$0xff]  ;;  %v423_v37 = vld [vmem:[%s785_s5 + $0x78] sm:$0xff]  ;;  %v422_v38 = vld [vmem:[%s785_s5 + $0x70] sm:$0xff] }
  0x18   : > { %312 = vmatpush.msra.mxu0 %v295_v6  ;;  %534 = vmatpush.msra.mxu3 %v295_v6  ;;  %v421_v40 = vld [vmem:[%s785_s5 + $0x68] sm:$0xff]  ;;  %v420_v42 = vld [vmem:[%s785_s5 + $0x60] sm:$0xff]  ;;  %v419_v44 = vld [vmem:[%s785_s5 + $0x58] sm:$0xff] }
  0x19   : > { %372 = vmatpush.msra.mxu1 %v357_v19  ;;  %428 = vmatpush.msra.mxu2 %v423_v37  ;;  %v418_v47 = vld [vmem:[%s785_s5 + $0x50] sm:$0xff]  ;;  %v417_v49 = vld [vmem:[%s785_s5 + $0x48] sm:$0xff]  ;;  %v416_v51 = vld [vmem:[%s785_s5 + $0x40] sm:$0xff] }
  0x1a   : > { %313 = vmatpush.msra.mxu0 %v294_v7  ;;  %535 = vmatpush.msra.mxu3 %v294_v7  ;;  %v415_v52 = vld [vmem:[%s785_s5 + $0x38] sm:$0xff]  ;;  %v414_v55 = vld [vmem:[%s785_s5 + $0x30] sm:$0xff]  ;;  %v413_v57 = vld [vmem:[%s785_s5 + $0x28] sm:$0xff] }
  0x1b   : > { %373 = vmatpush.msra.mxu1 %v356_v21  ;;  %429 = vmatpush.msra.mxu2 %v422_v38  ;;  %v412_v59 = vld [vmem:[%s785_s5 + $0x20] sm:$0xff]  ;;  %v411_v60 = vld [vmem:[%s785_s5 + $0x18] sm:$0xff]  ;;  %v410_v2 = vld [vmem:[%s785_s5 + $0x10] sm:$0xff] }
  0x1c   : > { %314 = vmatpush.msra.mxu0 %v293_v8  ;;  %536 = vmatpush.msra.mxu3 %v293_v8  ;;  %v409_v3 = vld [vmem:[%s785_s5 + $0x8] sm:$0xff]  ;;  %v408_v4 = vld [vmem:[%s785_s5] sm:$0xff] }
  0x1d   : > { %374 = vmatpush.msra.mxu1 %v355_v25  ;;  %430 = vmatpush.msra.mxu2 %v421_v40  ;;  %v553_v5 = vld [vmem:[%s784_s4] ss:$0 sm:$0xff] }
  0x1e   : > { %315 = vmatpush.msra.mxu0 %v292_v9  ;;  %537 = vmatpush.msra.mxu3 %v292_v9 }
  0x1f   : > { %375 = vmatpush.msra.mxu1 %v354_v26  ;;  %431 = vmatpush.msra.mxu2 %v420_v42 }
  0x20   : > { %316 = vmatpush.msra.mxu0 %v291_v12  ;;  %538 = vmatpush.msra.mxu3 %v291_v12 }
  0x21   : > { %376 = vmatpush.msra.mxu1 %v353_v27  ;;  %432 = vmatpush.msra.mxu2 %v419_v44 }
  0x22   : > { %317 = vmatpush.msra.mxu0 %v290_v14  ;;  %539 = vmatpush.msra.mxu3 %v290_v14 }
  0x23   : > { %377 = vmatpush.msra.mxu1 %v352_v28  ;;  %433 = vmatpush.msra.mxu2 %v418_v47 }
  0x24   : > { %318 = vmatpush.msra.mxu0 %v289_v16  ;;  %540 = vmatpush.msra.mxu3 %v289_v16 }
  0x25   : > { %378 = vmatpush.msra.mxu1 %v351_v30  ;;  %434 = vmatpush.msra.mxu2 %v417_v49 }
  0x26   : > { %319 = vmatpush.msra.mxu0 %v288_v18  ;;  %541 = vmatpush.msra.mxu3 %v288_v18 }
  0x27   : > { %379 = vmatpush.msra.mxu1 %v350_v31  ;;  %435 = vmatpush.msra.mxu2 %v416_v51 }
  0x28   : > { %320 = vmatpush.msra.mxu0 %v287_v20  ;;  %542 = vmatpush.msra.mxu3 %v287_v20 }
  0x29   : > { %380 = vmatpush.msra.mxu1 %v349_v33  ;;  %436 = vmatpush.msra.mxu2 %v415_v52 }
  0x2a   : > { %321 = vmatpush.msra.mxu0 %v286_v22  ;;  %543 = vmatpush.msra.mxu3 %v286_v22  ;;  %v554_v22 = vld [vmem:[%s786_s6] ss:$0 sm:$0xff] }
  0x2b   : > { %322 = vmatmul.f32.vlgmr.msra.gmra.mxu0 %v282_v23  ;;  %325 = vmatmul.f32.vlgmr.msra.gmra.mxu3 %v283_v24 }
  0x2c   : > { %381 = vmatpush.msra.mxu1 %v348_v34  ;;  %437 = vmatpush.msra.mxu2 %v414_v55 }
  0x2e   : > { %382 = vmatpush.msra.mxu1 %v347_v35  ;;  %438 = vmatpush.msra.mxu2 %v413_v57 }
  0x30   : > { %439 = vmatpush.msra.mxu2 %v412_v59 }
  0x32   : > { %440 = vmatpush.msra.mxu2 %v411_v60 }
  0x33   : > { %328 = vmatmul.f32.gmra.mxu3 %v284_v29 }
  0x34   : > { %441 = vmatpush.msra.mxu2 %v410_v2 }
  0x36   : > { %442 = vmatpush.msra.mxu2 %v409_v3 }
  0x38   : > { %443 = vmatpush.msra.mxu2 %v408_v4 }
  0x3b   : > { %331 = vmatmul.f32.gmra.mxu3 %v285_v32 }
  0xa8   : > { %v323_v39 = vpop.f32.mrf.mxu0 }
  0xa9   : > { %v324_v41 = vadd.f32 %v552_v36, %v323_v39 }
  0xab   : > { %vm335_vm0 = vcmp.ge.f32.partialorder %v324_v41, 0.0  ;;  %v339_v43 = vmul.f32 0.01, %v324_v41 }
  0xad   : > { %v343_v45 = vsel %vm335_vm0, %v324_v41, %v339_v43 }
  0xae   : > { %v326_v46 = vpop.f32.mrf.mxu3  ;;  %383 = vmatmul.f32.vlgmr.msra.gmra.mxu1 %v343_v45 }
  0xaf   : > { %v327_v48 = vadd.f32 %v552_v36, %v326_v46 }
  0xb1   : > { %v340_v50 = vmul.f32 0.01, %v327_v48  ;;  %vm336_vm1 = vcmp.ge.f32.partialorder %v327_v48, 0.0 }
  0xb3   : > { %v344_v53 = vsel %vm336_vm1, %v327_v48, %v340_v50 }
  0xb6   : > { %v329_v54 = vpop.f32.mrf.mxu3  ;;  %386 = vmatmul.f32.gmra.mxu1 %v344_v53 }
  0xb7   : > { %v330_v56 = vadd.f32 %v552_v36, %v329_v54 }
  0xb9   : > { %v341_v58 = vmul.f32 0.01, %v330_v56  ;;  %vm337_vm2 = vcmp.ge.f32.partialorder %v330_v56, 0.0 }
  0xbb   : > { %v345_v61 = vsel %vm337_vm2, %v330_v56, %v341_v58 }
  0xbe   : > { %v332_v62 = vpop.f32.mrf.mxu3  ;;  %389 = vmatmul.f32.gmra.mxu1 %v345_v61 }
  0xbf   : > { %v333_v63 = vadd.f32 %v552_v36, %v332_v62 }
  0xc1   : > { %v342_v0 = vmul.f32 0.01, %v333_v63  ;;  %vm338_vm3 = vcmp.ge.f32.partialorder %v333_v63, 0.0 }
  0xc3   : > { %v346_v1 = vsel %vm338_vm3, %v333_v63, %v342_v0 }
  0xc6   : > { %392 = vmatmul.f32.gmra.mxu1 %v346_v1 }
 0x12b   : > { %v384_v6 = vpop.f32.mrf.mxu1 }
 0x12c   : > { %v385_v7 = vadd.f32 %v553_v5, %v384_v6 }
 0x12e   : > { %vm396_vm4 = vcmp.ge.f32.partialorder %v385_v7, 0.0  ;;  %v400_v8 = vmul.f32 0.01, %v385_v7 }
 0x130   : > { %v404_v9 = vsel %vm396_vm4, %v385_v7, %v400_v8 }
 0x131   : > { %444 = vmatmul.f32.vlgmr.msra.gmra.mxu2 %v404_v9 }
 0x133   : > { %v387_v10 = vpop.f32.mrf.mxu1 }
 0x134   : > { %v388_v11 = vadd.f32 %v553_v5, %v387_v10 }
 0x136   : > { %vm397_vm5 = vcmp.ge.f32.partialorder %v388_v11, 0.0  ;;  %v401_v12 = vmul.f32 0.01, %v388_v11 }
 0x138   : > { %v405_v13 = vsel %vm397_vm5, %v388_v11, %v401_v12 }
 0x139   : > { %447 = vmatmul.f32.gmra.mxu2 %v405_v13 }
 0x13b   : > { %v390_v14 = vpop.f32.mrf.mxu1 }
 0x13c   : > { %v391_v15 = vadd.f32 %v553_v5, %v390_v14 }
 0x13e   : > { %vm398_vm6 = vcmp.ge.f32.partialorder %v391_v15, 0.0  ;;  %v402_v16 = vmul.f32 0.01, %v391_v15 }
 0x140   : > { %v406_v17 = vsel %vm398_vm6, %v391_v15, %v402_v16 }
 0x141   : > { %450 = vmatmul.f32.gmra.mxu2 %v406_v17 }
 0x143   : > { %v393_v18 = vpop.f32.mrf.mxu1 }
 0x144   : > { %v394_v19 = vadd.f32 %v553_v5, %v393_v18 }
 0x146   : > { %vm399_vm7 = vcmp.ge.f32.partialorder %v394_v19, 0.0  ;;  %v403_v20 = vmul.f32 0.01, %v394_v19 }
 0x148   : > { %v407_v21 = vsel %vm399_vm7, %v394_v19, %v403_v20 }
 0x149   : > { %453 = vmatmul.f32.gmra.mxu2 %v407_v21 }
 0x1b4   : > { %v445_v23 = vpop.f32.mrf.mxu2 }
 0x1b5   : > { %v446_v24 = vadd.f32 %v554_v22, %v445_v23 }
 0x1b7   : > { %457 = vst [vmem:[%s280_s10] sm:$0xff] %v446_v24 }
 0x1bc   : > { %v448_v25 = vpop.f32.mrf.mxu2 }
 0x1bd   : > { %v449_v26 = vadd.f32 %v554_v22, %v448_v25 }
 0x1bf   : > { %458 = vst [vmem:[%s280_s10 + $0x8] sm:$0xff] %v449_v26 }
 0x1c4   : > { %v451_v27 = vpop.f32.mrf.mxu2 }
 0x1c5   : > { %v452_v28 = vadd.f32 %v554_v22, %v451_v27 }
 0x1c7   : > { %459 = vst [vmem:[%s280_s10 + $0x10] sm:$0xff] %v452_v28 }
 0x1cc   : > { %v454_v29 = vpop.f32.mrf.mxu2 }
 0x1cd   : > { %v455_v30 = vadd.f32 %v554_v22, %v454_v29 }
 0x1cf   : > { %460 = vst [vmem:[%s280_s10 + $0x18] sm:$0xff] %v455_v30 }
 0x1d0 PF: > { %s17_s24 = sadd.s32 1, %s561_s24  }
 0x1d1   : > { %p14_p4 = scmp.ge.s32.totalorder %s17_s24, 4  }
 0x1d3   :  { %16 = sbr.rel (!%p14_p4) target bundleno = 1 (0x1), region = 78 }

</bundles_post_ra>
